<compile_context>
chip_gen: v7x
topology: tpu7x:2x2x1
jax: 0.10.0
libtpu: 0.0.40
codegen_flags: <defaults>
</compile_context>

<pallas_src>
import jax
import jax.numpy as jnp
from jax.experimental import pallas as pl
from jax.experimental.pallas import tpu as pltpu


def _round_up(n, m):
    return (n + m - 1) // m * m


def _encoder_stack_kernel(x_ref, w_ref, b_ref, o_ref, h_ref):
    """Fused encoder stack body.

    grid = (M_tiles, num_layers); layer axis is innermost and sequential.
      x_ref: (tm, Cp)     input activation tile (consumed at layer 0)
      w_ref: (1, Cp, Cp)  current layer's weight
      b_ref: (1, 1, Cp)   current layer's bias
      o_ref: (tm, Cp)     output tile (written at the last layer only)
      h_ref: (tm, Cp) f32 VMEM-resident activation carried across layers
    """
    layer = pl.program_id(1)

    @pl.when(layer == 0)
    def _():
        h_ref[...] = x_ref[...].astype(jnp.float32)

    y = jnp.dot(h_ref[...], w_ref[0], preferred_element_type=jnp.float32)
    y = jnp.maximum(y + b_ref[0], 0.0)          # (tm, Cp) + (1, Cp) broadcast
    h_ref[...] = y

    @pl.when(layer == pl.num_programs(1) - 1)
    def _():
        o_ref[...] = y.astype(o_ref.dtype)


def encoder_forward(x, params, *, tm=256):
    """
    Pallas equivalent of Encoder.forward.
    :param x: (B, L, C) activations
    :param params: list of (W: (C, C), b: (1, C)) per encoder layer
    :return: (B, L, C)
    """
    B, L, C = x.shape
    num_layers = len(params)
    if num_layers == 0:
        return x

    M = B * L
    Cp = _round_up(max(C, 128), 128)            # lane-dense feature dim
    tm = min(tm, _round_up(M, 8))               # 8-aligned M tile
    Mp = _round_up(M, tm)

    # Host-side zero padding (exact; sliced off below).
    x2d = jnp.zeros((Mp, Cp), x.dtype).at[:M, :C].set(x.reshape(M, C))
    w_stack = jnp.zeros((num_layers, Cp, Cp), x.dtype)
    b_stack = jnp.zeros((num_layers, 1, Cp), x.dtype)
    for i, (w, b) in enumerate(params):
        w_stack = w_stack.at[i, :C, :C].set(w)
        b_stack = b_stack.at[i, :, :C].set(b)

    grid = (Mp // tm, num_layers)
    itemsize = jnp.dtype(x.dtype).itemsize
    cost = pl.CostEstimate(
        flops=2 * Mp * Cp * Cp * num_layers,
        transcendentals=0,
        bytes_accessed=(2 * Mp * Cp + num_layers * (Cp * Cp + Cp)) * itemsize,
    )

    out = pl.pallas_call(
        _encoder_stack_kernel,
        out_shape=jax.ShapeDtypeStruct((Mp, Cp), x.dtype),
        grid=grid,
        in_specs=[
            pl.BlockSpec((tm, Cp), lambda m, l: (m, 0)),        # x tile (const over l)
            pl.BlockSpec((1, Cp, Cp), lambda m, l: (l, 0, 0)),  # layer weight
            pl.BlockSpec((1, 1, Cp), lambda m, l: (l, 0, 0)),   # layer bias
        ],
        out_specs=pl.BlockSpec((tm, Cp), lambda m, l: (m, 0)),  # written at last l
        scratch_shapes=[pltpu.VMEM((tm, Cp), jnp.float32)],
        compiler_params=pltpu.CompilerParams(
            dimension_semantics=("parallel", "arbitrary"),
        ),
        cost_estimate=cost,
    )(x2d, w_stack, b_stack)

    return out[:M, :C].reshape(B, L, C)


def init_params(key, num_layers, C, dtype=jnp.float32):
    params = []
    for i in range(num_layers):
        kw, kb, key = jax.random.split(jax.random.fold_in(key, i), 3)
        w = (jax.random.normal(kw, (C, C), dtype) / jnp.sqrt(C)).astype(dtype)
        b = (0.01 * jax.random.normal(kb, (1, C), dtype)).astype(dtype)
        params.append((w, b))
    return params


if __name__ == "__main__":
    key = jax.random.PRNGKey(0)
    B, L, C = 2, 8, 32          # batch, num nodes, feature dim
    num_layers = 3

    kx, kp = jax.random.split(key)
    x = jax.random.normal(kx, (B, L, C), jnp.float32)
    params = init_params(kp, num_layers, C)

    out = encoder_forward(x, params)
    out = jax.block_until_ready(out)

    # Sanity check against a pure-JAX reference of the same synthetic layers.
    ref = x.reshape(B * L, C)
    for (w, b) in params:
        ref = jnp.maximum(jnp.dot(ref, w, preferred_element_type=jnp.float32) + b, 0.0)
    ref = ref.reshape(B, L, C)

    assert out.shape == (B, L, C)
    assert jnp.allclose(out, ref, atol=1e-4, rtol=1e-4)

    print("KERNEL_OK")
</pallas_src>

<mosaic_0001>
module attributes {stable_mosaic.version = 11 : i64} {
  func.func @_encoder_stack_kernel(%arg0: i32, %arg1: i32, %arg2: memref<16x128xf32, #tpu.memory_space<vmem>>, %arg3: memref<1x128x128xf32, #tpu.memory_space<vmem>>, %arg4: memref<1x1x128xf32, #tpu.memory_space<vmem>>, %arg5: memref<16x128xf32, #tpu.memory_space<vmem>>, %arg6: memref<16x128xf32, #tpu.memory_space<vmem>>) attributes {dimension_semantics = [#tpu.dimension_semantics<parallel>, #tpu.dimension_semantics<arbitrary>], iteration_bounds = array<i64: 1, 3>, scalar_prefetch = 0 : i64, scratch_operands = 1 : i64, tpu.core_type = #tpu.core_type<tc>, window_params = [{transform_indices = @transform_0, window_bounds = array<i64: 16, 128>}, {transform_indices = @transform_1, window_bounds = array<i64: 1, 128, 128>}, {transform_indices = @transform_2, window_bounds = array<i64: 1, 1, 128>}, {transform_indices = @transform_3, window_bounds = array<i64: 16, 128>}]} {
    %c0_i32 = arith.constant 0 : i32
    %0 = arith.cmpi eq, %arg1, %c0_i32 : i32
    %1 = arith.extui %0 : i1 to i32
    %c0_i32_0 = arith.constant 0 : i32
    %2 = arith.cmpi ne, %1, %c0_i32_0 : i32
    scf.if %2 {
      %c0_12 = arith.constant 0 : index
      %c0_13 = arith.constant 0 : index
      %17 = vector.load %arg2[%c0_12, %c0_13] : memref<16x128xf32, #tpu.memory_space<vmem>>, vector<16x128xf32>
      %c0_14 = arith.constant 0 : index
      %c0_15 = arith.constant 0 : index
      %18 = vector.load %arg6[%c0_14, %c0_15] : memref<16x128xf32, #tpu.memory_space<vmem>>, vector<16x128xf32>
      tpu.vector_store %arg6[%c0_14, %c0_15], %17 {strides = array<i32>} : memref<16x128xf32, #tpu.memory_space<vmem>>, vector<16x128xf32>,
    } else {
    }
    %c0 = arith.constant 0 : index
    %c0_1 = arith.constant 0 : index
    %3 = vector.load %arg6[%c0, %c0_1] : memref<16x128xf32, #tpu.memory_space<vmem>>, vector<16x128xf32>
    %c0_2 = arith.constant 0 : index
    %c0_3 = arith.constant 0 : index
    %c0_4 = arith.constant 0 : index
    %4 = vector.load %arg3[%c0_2, %c0_3, %c0_4] : memref<1x128x128xf32, #tpu.memory_space<vmem>>, vector<1x128x128xf32>
    %5 = vector.shape_cast %4 : vector<1x128x128xf32> to vector<128x128xf32>
    %cst = arith.constant dense<0.000000e+00> : vector<16x128xf32>
    %6 = tpu.matmul %3, %5, %cst {dimension_numbers = #tpu.dot_dimension_numbers<[1], [0], [0], [1], [0, 0, 1, 1], [], []>} : vector<16x128xf32>, vector<128x128xf32>, vector<16x128xf32> -> vector<16x128xf32>
    %c0_5 = arith.constant 0 : index
    %c0_6 = arith.constant 0 : index
    %c0_7 = arith.constant 0 : index
    %7 = vector.load %arg4[%c0_5, %c0_6, %c0_7] : memref<1x1x128xf32, #tpu.memory_space<vmem>>, vector<1x1x128xf32>
    %8 = vector.shape_cast %7 : vector<1x1x128xf32> to vector<1x128xf32>
    %9 = vector.broadcast %8 : vector<1x128xf32> to vector<16x128xf32>
    %10 = arith.addf %6, %9 : vector<16x128xf32>
    %cst_8 = arith.constant 0.000000e+00 : f32
    %11 = vector.broadcast %cst_8 : f32 to vector<16x128xf32>
    %12 = arith.maximumf %10, %11 : vector<16x128xf32>
    %c0_9 = arith.constant 0 : index
    %c0_10 = arith.constant 0 : index
    %13 = vector.load %arg6[%c0_9, %c0_10] : memref<16x128xf32, #tpu.memory_space<vmem>>, vector<16x128xf32>
    tpu.vector_store %arg6[%c0_9, %c0_10], %12 {strides = array<i32>} : memref<16x128xf32, #tpu.memory_space<vmem>>, vector<16x128xf32>,
    %c2_i32 = arith.constant 2 : i32
    %14 = arith.cmpi eq, %arg1, %c2_i32 : i32
    %15 = arith.extui %14 : i1 to i32
    %c0_i32_11 = arith.constant 0 : i32
    %16 = arith.cmpi ne, %15, %c0_i32_11 : i32
    scf.if %16 {
      %c0_12 = arith.constant 0 : index
      %c0_13 = arith.constant 0 : index
      %17 = vector.load %arg5[%c0_12, %c0_13] : memref<16x128xf32, #tpu.memory_space<vmem>>, vector<16x128xf32>
      tpu.vector_store %arg5[%c0_12, %c0_13], %12 {strides = array<i32>} : memref<16x128xf32, #tpu.memory_space<vmem>>, vector<16x128xf32>,
    } else {
    }
    return
  }
  func.func @transform_0(%arg0: i32, %arg1: i32) -> (i32, i32) {
    %c0_i32 = arith.constant 0 : i32
    %c0_i32_0 = arith.constant 0 : i32
    return %arg0, %c0_i32 : i32, i32
  }
  func.func @transform_1(%arg0: i32, %arg1: i32) -> (i32, i32, i32) {
    %c0_i32 = arith.constant 0 : i32
    %c0_i32_0 = arith.constant 0 : i32
    %c0_i32_1 = arith.constant 0 : i32
    return %arg1, %c0_i32, %c0_i32_0 : i32, i32, i32
  }
  func.func @transform_2(%arg0: i32, %arg1: i32) -> (i32, i32, i32) {
    %c0_i32 = arith.constant 0 : i32
    %c0_i32_0 = arith.constant 0 : i32
    %c0_i32_1 = arith.constant 0 : i32
    return %arg1, %c0_i32, %c0_i32_0 : i32, i32, i32
  }
  func.func @transform_3(%arg0: i32, %arg1: i32) -> (i32, i32) {
    %c0_i32 = arith.constant 0 : i32
    %c0_i32_0 = arith.constant 0 : i32
    return %arg0, %c0_i32 : i32, i32
  }
}

</mosaic_0001>

<bundles_post_ra>
// kernel: tpu_custom_call.1
= control target key start
LH: loop header
LB: loop body
LE: loop exit
PB: predicated region body
PF: predicated region fallthrough
CT: control target
= control target key end

     0   :  { %8 = vsyncpa [#allocation4], 0  ;;  %s1020_s0 = inlined_call_operand.hbm [shape: f32[16,128], index: 0, kind: input, shape index: {}]   ;;  %s1021_s1 = inlined_call_operand.hbm [shape: f32[3,128,128], index: 1, kind: input, shape index: {}]   ;;  %s1022_s2 = inlined_call_operand.vmem [shape: f32[3,1,128], index: 2, kind: input, shape index: {}]   ;;  %s1023_s3 = inlined_call_operand.hbm [shape: f32[16,128], index: 3, kind: output, shape index: {}]  }
   0x1   :  { %9 = vsyncpa [#allocation7], 0 }
   0x2   :  { %11 = vsyncpa [#allocation7 + $0x1], 0 }
   0x3   :  { %12 = vsyncpa [#allocation5], 0  ;;  %s798_s12 = smov 0   ;;  %s800_s13 = smov 0  }
   0x4   :  { %s802_s14 = smov 0   ;;  %s804_s15 = smov 0  }
   0x5   :  { %s806_s16 = smov 0   ;;  %s808_s17 = smov 0  }
   0x6 LB: > { %s447_s18 = sadd.s32 4294967295, %s769_s17   ;;  %p76_p0 = scmp.ne.s32.totalorder %s753_s13, %s749_s12  ;;  %s769_s17 = sphi %s808_s17, %s18_s17   ;;  %s765_s16 = sphi %s806_s16, %s1041_s16   ;;  %s761_s15 = sphi %s804_s15, %s1040_s15   ;;  %s757_s14 = sphi %s802_s14, %s1039_s14   ;;  %s753_s13 = sphi %s800_s13, %s1038_s13   ;;  %s749_s12 = sphi %s798_s12, %s1037_s12  }
   0x7   : > { %p830_p1 = scmp.eq.s32.totalorder %s447_s18, 0  ;;  %p448_p2 = scmp.ge.s32.totalorder %s769_s17, 1 }
   0x8   : > { %p139_p3 = scmp.lt.s32.totalorder %s769_s17, 4  ;;  %s771_s22 = smov [#allocation3]  }
   0x9   : > { %s1028_s19 = scalar_select %p830_p1, 1, 0 }
   0xa   : > { %p838_p4 = por %p830_p1, %p76_p0  ;;  %p842_p5 = pnand %p448_p2, %p139_p3 }
   0xb   : > { %s154_s23 = sshll.u32 %s771_s22, 4  ;;  %s27_s25 = sadd.s32 1, %s765_s16  ;;  %s155_s23 = int_to_ptr.vmem [resolvable:$true] %s154_s23 }
   0xc   : > { %s1029_s20 = scalar_select %p838_p4, 1, 0 }
   0xd   : > { %s1030_s21 = scalar_select %p842_p5, 1, 0 }
   0xe   : > { %p560_p6 = pneg %p842_p5  ;;  %s627_s28 = scalar_lea.hbm %s1020_s0, 256 }
   0xf   : > { %p628_p8 = scmp.ne.s32.totalorder %s1020_s0, %s627_s28  ;;  %p634_p12 = scmp.lt.u32.totalorder %s627_s28, %s1020_s0 }
  0x10   : > { %p850_p7 = pnand %p560_p6, %p830_p1 }
  0x12   : > { %p629_p9 = pneg %p850_p7 }
  0x14   : > { %p630_p10 = pnand %p629_p9, %p628_p8 }
  0x16   : > { %p631_p11 = pneg %p630_p10 }
  0x18   : > { %p636_p13 = pnand %p634_p12, %p631_p11 }
  0x1a   : > { %639 = shalt.err (!%p636_p13)
}
  0x1b   : > { %s640_s6 = scalar_lea.vmem %s155_s23, 256  ;;  %p648_p6 = scmp.lt.s32.totalorder %s155_s23, %s155_s23 }
  0x1c   : > { %p641_p0 = scmp.ne.s32.totalorder %s155_s23, %s640_s6  ;;  %p649_p4 = scmp.lt.s32.totalorder %s640_s6, %s640_s6 }
  0x1e   : > { %p643_p2 = pnand %p641_p0, %p629_p9  ;;  %p650_p1 = por %p649_p4, %p648_p6 }
  0x20   : > { %p644_p3 = pneg %p643_p2 }
  0x22   : > { %p651_p5 = pnand %p650_p1, %p644_p3 }
  0x24   : > { %654 = shalt.err (!%p651_p5)
}
  0x25   : > { %s772_s7 = smov 128   ;;  %s773_s8 = smov 8  }
  0x26   : > { %563 = dma.hbm_to_vmem [thread:$0]  (!%p850_p7), %s1020_s0, 256, %s155_s23, [#allocation4], %s772_s7, %s772_s7, %s773_s8  }
  0x27   : > { %p28_p1 = scmp.ge.s32.totalorder %s27_s25, 3  ;;  %s63_s11 = sadd.s32 1, %s757_s14 }
  0x28   : > { %p70_p4 = scmp.ne.s32.totalorder %s757_s14, %s753_s13  ;;  %p71_p5 = scmp.eq.s32.totalorder %s769_s17, 0 }
  0x29   : > { %s1043_s25 = smov (%p28_p1, %s27_s25), 0  ;;  %p569_p9 = scmp.lt.s32.totalorder %s769_s17, 3 }
  0x2a   : > { %p72_p8 = por %p71_p5, %p70_p4  ;;  %s60_s12 = ssub.s32 %s765_s16, %s1043_s25 }
  0x2b   : > { %s168_s22 = sand.u32 1, %s757_s14   ;;  %p61_p10 = scmp.eq.s32.totalorder %s60_s12, 0 }
  0x2c   : > { %s451_s24 = sshll.u32 %s168_s22, 7  ;;  %s464_s26 = sshll.u32 %s765_s16, 11 }
  0x2d   : > { %s886_s27 = scalar_select %p61_p10, %s757_s14, %s63_s11  }
  0x2e   : > { %s891_s23 = scalar_lea.hbm %s1021_s1, %s464_s26  ;;  %s172_s30 = scalar_lea.vmem [#allocation6], %s451_s24 }
  0x2f   : > { %s179_s4 = sshll.u32 %s172_s30, 4  ;;  %p893_p7 = pnand %p569_p9, %p72_p8  ;;  %s897_s4 = int_to_ptr.vmem [resolvable:$true] %s179_s4 }
  0x30   : > { %s899_s6 = scalar_lea.sflag [#allocation7], %s168_s22  ;;  %s655_s9 = scalar_lea.hbm %s891_s23, 2048 }
  0x31   : > { %p656_p11 = scmp.ne.s32.totalorder %s891_s23, %s655_s9  ;;  %p657_p12 = pneg %p893_p7 }
  0x32   : > { %s660_s12 = scalar_lea.hbm %s1021_s1, 6144  ;;  %p661_p2 = scmp.lt.u32.totalorder %s891_s23, %s1021_s1 }
  0x33   : > { %p658_p13 = pnand %p657_p12, %p656_p11  ;;  %p662_p3 = scmp.lt.u32.totalorder %s660_s12, %s655_s9 }
  0x34   : > { %p664_p1 = scmp.lt.u32.totalorder %s655_s9, %s891_s23 }
  0x35   : > { %p659_p0 = pneg %p658_p13  ;;  %p663_p6 = por %p662_p3, %p661_p2 }
  0x37   : > { %p665_p4 = por %p664_p1, %p663_p6 }
  0x39   : > { %p666_p5 = pnand %p665_p4, %p659_p0 }
  0x3b   : > { %669 = shalt.err (!%p666_p5)
}
  0x3c   : > { %s670_s22 = scalar_lea.vmem %s897_s4, 2048  ;;  %s774_s28 = smov [#allocation6]  }
  0x3d   : > { %p671_p8 = scmp.ne.s32.totalorder %s897_s4, %s670_s22  ;;  %s675_s29 = sshll.u32 %s774_s28, 4  ;;  %s676_s29 = int_to_ptr.vmem [resolvable:$false] %s675_s29 }
  0x3e   : > { %s677_s30 = scalar_lea.vmem %s676_s29, 4096  ;;  %p678_p11 = scmp.lt.s32.totalorder %s897_s4, %s676_s29 }
  0x3f   : > { %p673_p9 = pnand %p671_p8, %p657_p12  ;;  %p679_p13 = scmp.lt.s32.totalorder %s677_s30, %s670_s22 }
  0x41   : > { %p674_p10 = pneg %p673_p9  ;;  %p680_p2 = por %p679_p13, %p678_p11 }
  0x43   : > { %p681_p3 = pnand %p680_p2, %p674_p10 }
  0x45   : > { %684 = shalt.err (!%p681_p3)
}
  0x46   : > { %567 = dma.hbm_to_vmem [thread:$0]  (!%p893_p7), %s891_s23, 2048, %s897_s4, %s899_s6, %s772_s7, %s772_s7, %s773_s8  }
  0x47   : > { %p1033_p12 = scmp.ne.s32.totalorder %s1030_s21, 0 }
  0x48   : > { %p1034_p0 = scmp.ne.s32.totalorder (!%p1033_p12), %s1028_s19, 0 }
  0x49   : > { %197 = sbr.rel (%p1033_p12) target bundleno = 374 (0x176), region = 32 }
  0x50   : > { %736 = dma.done.wait (%p1034_p0), [#allocation4], 256  }
  0x51   : > { %738 = vsyncadd (%p1034_p0), [#allocation4], 4294967040  ;;  %s203_s9 = sand.u32 1, %s753_s13   ;;  %p1035_p6 = scmp.ne.s32.totalorder %s1029_s20, 0 }
  0x52   : > { %s456_s5 = sshll.u32 %s203_s9, 7  ;;  %s204_s10 = scalar_lea.sflag [#allocation7], %s203_s9 }
  0x53   : > { %s937_s11 = scalar_lea.vmem [#allocation6], %s456_s5 }
  0x54   : > { %740 = dma.done.wait (%p1035_p6), %s204_s10, 2048  }
  0x55   : > { %742 = vsyncadd (%p1035_p6), %s204_s10, 4294965248  ;;  %p229_p7 = scmp.lt.s32.totalorder %s761_s15, 2  ;;  %p457_p1 = scmp.ne.s32.totalorder %s761_s15, 0 }
  0x56   : > { %v237_v0 = vld [vmem:[#allocation3] sm:$0xff] (!%p457_p1)  ;;  %v238_v1 = vld [vmem:[#allocation3 + $0x8] sm:$0xff] (!%p457_p1) }
  0x57   : > { %s945_s21 = scalar_select %p229_p7, %s761_s15, 2 }
  0x58   : > { %236 = sbr.rel (%p457_p1) target bundleno = 95 (0x5f), region = 44  ;;  %239 = vst [vmem:[#allocation2] sm:$0xff] (!%p457_p1), %v237_v0  ;;  %240 = vst [vmem:[#allocation2 + $0x8] sm:$0xff] (!%p457_p1), %v238_v1 }
  0x59   : > { %s231_s8 = scalar_lea.vmem %s1022_s2, %s945_s21 }
  0x5f PF: > { %v243_v2 = vld [vmem:[%s937_s11] sm:$0xff]  ;;  %v244_v3 = vld [vmem:[%s937_s11 + $0x8] sm:$0xff]  ;;  %v245_v4 = vld [vmem:[%s937_s11 + $0x10] sm:$0xff]  ;;  %p459_p4 = scmp.ne.s32.totalorder %s761_s15, 2 }
  0x60   : > { %v518_v5 = vpack.c.bf16 %v244_v3, %v243_v2  ;;  %v246_v6 = vld [vmem:[%s937_s11 + $0x18] sm:$0xff]  ;;  %v247_v8 = vld [vmem:[%s937_s11 + $0x20] sm:$0xff]  ;;  %v248_v9 = vld [vmem:[%s937_s11 + $0x28] sm:$0xff] }
  0x61   : > { %v522_v7 = vpack.c.bf16 %v246_v6, %v245_v4  ;;  %v526_v10 = vpack.c.bf16 %v248_v9, %v247_v8  ;;  %v241_v11 = vld [vmem:[#allocation2] sm:$0xff]  ;;  %v249_v12 = vld [vmem:[%s937_s11 + $0x30] sm:$0xff]  ;;  %v250_v13 = vld [vmem:[%s937_s11 + $0x38] sm:$0xff] }
  0x62   : > { %519 = vmatprep.subr.bf16.mxu0 %v518_v5  ;;  %515 = vmatprep.mubr.f32.mxu0 %v241_v11  ;;  %v530_v14 = vpack.c.bf16 %v250_v13, %v249_v12  ;;  %v251_v15 = vld [vmem:[%s937_s11 + $0x40] sm:$0xff]  ;;  %v252_v16 = vld [vmem:[%s937_s11 + $0x48] sm:$0xff]  ;;  %v253_v18 = vld [vmem:[%s937_s11 + $0x50] sm:$0xff] }
  0x63   : > { %521 = vmatpush3.bf16.msra.mxu0 %v518_v5  ;;  %v534_v17 = vpack.c.bf16 %v252_v16, %v251_v15  ;;  %v254_v19 = vld [vmem:[%s937_s11 + $0x58] sm:$0xff]  ;;  %v255_v21 = vld [vmem:[%s937_s11 + $0x60] sm:$0xff]  ;;  %v256_v22 = vld [vmem:[%s937_s11 + $0x68] sm:$0xff] }
  0x64   : > { %523 = vmatprep.subr.bf16.mxu0 %v522_v7  ;;  %v538_v20 = vpack.c.bf16 %v254_v19, %v253_v18  ;;  %v542_v23 = vpack.c.bf16 %v256_v22, %v255_v21  ;;  %v257_v24 = vld [vmem:[%s937_s11 + $0x70] sm:$0xff]  ;;  %v258_v25 = vld [vmem:[%s937_s11 + $0x78] sm:$0xff]  ;;  %v242_v27 = vld [vmem:[#allocation2 + $0x8] sm:$0xff] }
  0x65   : > { %v546_v26 = vpack.c.bf16 %v258_v25, %v257_v24  ;;  %v458_v28 = vld [vmem:[%s231_s8] ss:$0 sm:$0xff] }
  0x67   : > { %525 = vmatpush3.bf16.msra.mxu0 %v522_v7 }
  0x68   : > { %527 = vmatprep.subr.bf16.mxu0 %v526_v10 }
  0x6b   : > { %529 = vmatpush3.bf16.msra.mxu0 %v526_v10 }
  0x6c   : > { %531 = vmatprep.subr.bf16.mxu0 %v530_v14 }
  0x6f   : > { %533 = vmatpush3.bf16.msra.mxu0 %v530_v14 }
  0x70   : > { %535 = vmatprep.subr.bf16.mxu0 %v534_v17 }
  0x73   : > { %537 = vmatpush3.bf16.msra.mxu0 %v534_v17 }
  0x74   : > { %539 = vmatprep.subr.bf16.mxu0 %v538_v20 }
  0x77   : > { %541 = vmatpush3.bf16.msra.mxu0 %v538_v20 }
  0x78   : > { %543 = vmatprep.subr.bf16.mxu0 %v542_v23 }
  0x7b   : > { %545 = vmatpush3.bf16.msra.mxu0 %v542_v23 }
  0x7c   : > { %547 = vmatprep.subr.bf16.mxu0 %v546_v26 }
  0x7f   : > { %549 = vmatpush3.bf16.msra.mxu0 %v546_v26 }
  0x82   : > { %516 = vmatmul.mubr.f32.vlgmr.msra.gmra.mrb[0].mxu0 %v242_v27 }
 0x155   : > { %v517_v29 = vpop.f32.mrb[0].mxu0  ;;  %348 = sbr.rel (%p459_p4) target bundleno = 348 (0x15c), region = 48 }
 0x156   : > { %v338_v30 = vadd.f32 %v517_v29, %v458_v28  ;;  %v332_v31 = vpop.f32.mrb[1].mxu0 }
 0x157   : > { %v333_v32 = vadd.f32 %v458_v28, %v332_v31 }
 0x158   : > { %v342_v33 = vmax.f32 %v338_v30, 0.0 }
 0x159   : > { %v341_v34 = vmax.f32 %v333_v32, 0.0 }
 0x15a   : > { %344 = vst [vmem:[#allocation2 + $0x8] sm:$0xff] %v342_v33  ;;  %350 = vst [vmem:[#allocation8 + $0x8] sm:$0xff] (!%p459_p4), %v342_v33 }
 0x15b   : > { %343 = vst [vmem:[#allocation2] sm:$0xff] %v341_v34  ;;  %349 = vst [vmem:[#allocation8] sm:$0xff] (!%p459_p4), %v341_v34 }
 0x15c PF: > { %p976_p5 = scmp.eq.s32.totalorder %s447_s18, 2  ;;  %s775_s6 = smov [#allocation8]  }
 0x15d   : > { %s360_s12 = sshll.u32 %s775_s6, 4  ;;  %s361_s12 = int_to_ptr.vmem [resolvable:$true] %s360_s12 }
 0x15e   : > { %s685_s24 = scalar_lea.vmem %s361_s12, 256  ;;  %p692_p11 = scmp.lt.s32.totalorder %s361_s12, %s361_s12 }
 0x15f   : > { %p686_p8 = scmp.ne.s32.totalorder %s361_s12, %s685_s24  ;;  %p693_p13 = scmp.lt.s32.totalorder %s685_s24, %s685_s24 }
 0x161   : > { %p687_p9 = pnand %p686_p8, %p976_p5  ;;  %p694_p2 = por %p693_p13, %p692_p11 }
 0x163   : > { %p688_p10 = pneg %p687_p9 }
 0x165   : > { %p695_p3 = pnand %p694_p2, %p688_p10 }
 0x167   : > { %698 = shalt.err (!%p695_p3)
}
 0x168   : > { %s699_s18 = scalar_lea.hbm %s1023_s3, 256 }
 0x169   : > { %p700_p12 = scmp.ne.s32.totalorder %s1023_s3, %s699_s18  ;;  %p705_p7 = scmp.lt.u32.totalorder %s699_s18, %s1023_s3 }
 0x16b   : > { %p701_p0 = pnand %p700_p12, %p976_p5 }
 0x16d   : > { %p702_p6 = pneg %p701_p0 }
 0x16f   : > { %p707_p1 = pnand %p705_p7, %p702_p6 }
 0x171   : > { %710 = shalt.err (!%p707_p1)
}
 0x172   : > { %s776_s9 = smov 128   ;;  %s777_s5 = smov 8  }
 0x173   : > { %557 = dma.vmem_to_hbm [thread:$0]  (%p976_p5), %s361_s12, 256, %s1023_s3, [#allocation5], %s776_s9, %s776_s9, %s777_s5  }
 0x174   : > { %744 = dma.done.wait (%p976_p5), [#allocation5], 256  }
 0x175   : > { %746 = vsyncadd (%p976_p5), [#allocation5], 4294967040 }
 0x176 PF: > { %s18_s17 = sadd.s32 1, %s769_s17   ;;  %s1037_s12 = smov %s753_s13 }
 0x177   : > { %p15_p4 = scmp.ge.s32.totalorder %s18_s17, 5   ;;  %s1038_s13 = smov %s757_s14 }
 0x178   : > { %s1039_s14 = smov %s886_s27  ;;  %s1040_s15 = smov %s765_s16 }
 0x179   : > { %s1041_s16 = smov %s1043_s25  ;;  %17 = sbr.rel (!%p15_p4) target bundleno = 6 (0x6), region = 87 }
 0x180   :  { %376 = vsyncpa [#allocation4], 1 }
 0x181   :  { %378 = vsyncpa [#allocation4 + $0x1], 1 }
 0x182   :  { %379 = vsyncpa [#allocation7], 1 }
 0x183   :  { %381 = vsyncpa [#allocation7 + $0x1], 1 }
 0x184   :  { %382 = vsyncpa [#allocation5], 1 }
 0x185   :  { %384 = vsyncpa [#allocation5 + $0x1], 1 }

</bundles_post_ra>
